<compile_context>
chip_gen: v7x
topology: tpu7x:2x2x1
jax: 0.10.0
libtpu: 0.0.40
codegen_flags: <defaults>
</compile_context>

<pallas_src>
import jax
import jax.numpy as jnp
from jax.experimental import pallas as pl
from jax.experimental.pallas import tpu as pltpu

# ---- problem sizes (small, consistent with the module) ----
B = 2          # batch
C = 4          # DNA one-hot channels (fixed by module)
L = 16         # sequence length
M = 8          # nummotif
K = 5          # motiflen
H = 32         # hidden width (fixed by module when neuType != 'nohidden')
LOUT = L - K + 1
CK = C * K

DROPPROB = 0.5
SIGMA_CONV = 0.1
SIGMA_NEU = 0.1


def convnet_kernel(xs_ref, wconv_ref, wrect_ref, whmax_ref, whavg_ref,
                   whidb_ref, wneu_ref, wneub_ref, out_ref):
    # xs_ref : (B, LOUT, C*K)  im2col'd input (built in the wrapper)
    # wconv  : (C*K, M)        conv weight, already reshaped/transposed
    xs = xs_ref[...]

    # conv1d (valid, stride 1) as a single im2col matmul on the MXU.
    conv = jnp.dot(xs, wconv_ref[...],
                   preferred_element_type=jnp.float32)        # (B, LOUT, M)
    conv = conv + wrect_ref[...]                               # (1, M) broadcast
    rect = jnp.maximum(conv, 0.0)                              # ReLU

    max_pool = jnp.max(rect, axis=1)                           # (B, M)
    avg_pool = jnp.mean(rect, axis=1)                          # (B, M)

    # hidden layer: split-weight form avoids the lane-offset concat.
    hid = (jnp.dot(max_pool, whmax_ref[...], preferred_element_type=jnp.float32)
           + jnp.dot(avg_pool, whavg_ref[...], preferred_element_type=jnp.float32)
           + whidb_ref[...])                                   # (B, H)
    hid = jnp.maximum(hid, 0.0)

    # wneu_ref already carries the eval-mode DROPPROB scale (folded once).
    out = jnp.dot(hid, wneu_ref[...],
                  preferred_element_type=jnp.float32) + wneub_ref[...]
    out_ref[...] = out                                         # (B, 1)


def convnet_forward(x, wConv, wRect, wHidden, wHiddenBias, wNeu_eff, wNeuBias):
    """x: (B, C, L) NCL, like F.conv1d.  wNeu_eff = DROPPROB * wNeu (pre-folded)."""
    # ---- wrapper-side layout plumbing (free, outside the kernel) ----
    # im2col: gather the K-wide windows once -> (B, LOUT, C*K), c-major/k-minor.
    xs = jnp.stack(
        [x[:, :, t:t + K].reshape(B, CK) for t in range(LOUT)], axis=1)
    # conv weight: (M, C, K) -> (C*K, M), same c-major/k-minor flatten order.
    wconv2d = wConv.reshape(M, CK).T
    # hidden weight split: rows 0..M-1 act on max-pool, rows M..2M-1 on avg-pool.
    wh_max = wHidden[:M]                      # (M, H)
    wh_avg = wHidden[M:]                      # (M, H)
    # small 1-D params reshaped to 2-D for TPU-friendly layouts.
    wrect2d = wRect.reshape(1, M)
    whidb2d = wHiddenBias.reshape(1, H)
    wneub2d = wNeuBias.reshape(1, 1)

    vmem = pl.BlockSpec(memory_space=pltpu.MemorySpace.VMEM)
    return pl.pallas_call(
        convnet_kernel,
        out_shape=jax.ShapeDtypeStruct((B, 1), jnp.float32),
        in_specs=[vmem] * 8,
        out_specs=vmem,
    )(xs, wconv2d, wrect2d, wh_max, wh_avg, whidb2d, wNeu_eff, wneub2d)


def reference_forward(x, wConv, wRect, wHidden, wHiddenBias, wNeu, wNeuBias):
    # Pure-JAX reference mirroring the PyTorch forward_pass (eval mode).
    conv = jnp.stack(
        [jnp.einsum('bck,mck->bm', x[:, :, t:t + K], wConv) for t in range(LOUT)],
        axis=2)                                     # (B, M, Lout)
    conv = conv + wRect[None, :, None]
    rect = jnp.maximum(conv, 0.0)
    pool = jnp.concatenate([rect.max(axis=2), rect.mean(axis=2)], axis=1)
    hid = jnp.maximum(pool @ wHidden + wHiddenBias, 0.0)
    return DROPPROB * (hid @ wNeu) + wNeuBias


if __name__ == "__main__":
    key = jax.random.PRNGKey(0)
    kx, kc, kr, kh, khb, kn, knb = jax.random.split(key, 7)

    # deterministic parameter init, matching the module's shapes / std devs
    x = jax.random.normal(kx, (B, C, L), jnp.float32)
    wConv = SIGMA_CONV * jax.random.normal(kc, (M, C, K), jnp.float32)
    wRect = -jax.random.normal(kr, (M,), jnp.float32)          # negated normal
    wHidden = 0.3 * jax.random.normal(kh, (2 * M, H), jnp.float32)
    wHiddenBias = 0.3 * jax.random.normal(khb, (H,), jnp.float32)
    wNeu = SIGMA_NEU * jax.random.normal(kn, (H, 1), jnp.float32)
    wNeuBias = SIGMA_NEU * jax.random.normal(knb, (1,), jnp.float32)

    # one-time constant fold of the eval-mode dropout scale into the weight
    wNeu_eff = DROPPROB * wNeu

    out = convnet_forward(x, wConv, wRect, wHidden, wHiddenBias, wNeu_eff,
                          wNeuBias)
    out = jax.block_until_ready(out)

    ref = reference_forward(x, wConv, wRect, wHidden, wHiddenBias, wNeu, wNeuBias)
    assert out.shape == (B, 1)
    assert jnp.allclose(out, ref, atol=1e-4, rtol=1e-4), (out, ref)
    print("KERNEL_OK")
</pallas_src>

<mosaic_0001>
module attributes {stable_mosaic.version = 11 : i64} {
  func.func @convnet_kernel(%arg0: memref<2x12x20xf32, #tpu.memory_space<vmem>>, %arg1: memref<20x8xf32, #tpu.memory_space<vmem>>, %arg2: memref<1x8xf32, #tpu.memory_space<vmem>>, %arg3: memref<8x32xf32, #tpu.memory_space<vmem>>, %arg4: memref<8x32xf32, #tpu.memory_space<vmem>>, %arg5: memref<1x32xf32, #tpu.memory_space<vmem>>, %arg6: memref<32x1xf32, #tpu.memory_space<vmem>>, %arg7: memref<1x1xf32, #tpu.memory_space<vmem>>, %arg8: memref<2x1xf32, #tpu.memory_space<vmem>>) attributes {dimension_semantics = [], scalar_prefetch = 0 : i64, scratch_operands = 0 : i64, tpu.core_type = #tpu.core_type<tc>} {
    %c0 = arith.constant 0 : index
    %c0_0 = arith.constant 0 : index
    %c0_1 = arith.constant 0 : index
    %0 = vector.load %arg0[%c0, %c0_0, %c0_1] : memref<2x12x20xf32, #tpu.memory_space<vmem>>, vector<2x12x20xf32>
    %c0_2 = arith.constant 0 : index
    %c0_3 = arith.constant 0 : index
    %1 = vector.load %arg1[%c0_2, %c0_3] : memref<20x8xf32, #tpu.memory_space<vmem>>, vector<20x8xf32>
    %cst = arith.constant dense<0.000000e+00> : vector<2x12x8xf32>
    %2 = tpu.matmul %0, %1, %cst {dimension_numbers = #tpu.dot_dimension_numbers<[2], [0], [0, 1], [1], [0, 0, 0, 1, 1, 1], [], []>} : vector<2x12x20xf32>, vector<20x8xf32>, vector<2x12x8xf32> -> vector<2x12x8xf32>
    %c0_4 = arith.constant 0 : index
    %c0_5 = arith.constant 0 : index
    %3 = vector.load %arg2[%c0_4, %c0_5] : memref<1x8xf32, #tpu.memory_space<vmem>>, vector<1x8xf32>
    %4 = vector.shape_cast %3 : vector<1x8xf32> to vector<1x1x8xf32>
    %5 = vector.broadcast %4 : vector<1x1x8xf32> to vector<2x12x8xf32>
    %6 = arith.addf %2, %5 : vector<2x12x8xf32>
    %cst_6 = arith.constant 0.000000e+00 : f32
    %7 = vector.broadcast %cst_6 : f32 to vector<2x12x8xf32>
    %8 = arith.maximumf %6, %7 : vector<2x12x8xf32>
    %cst_7 = arith.constant dense<0xFF800000> : vector<2x8xf32>
    %9 = vector.multi_reduction <maximumf>, %8, %cst_7 [1] : vector<2x12x8xf32> to vector<2x8xf32>
    %cst_8 = arith.constant dense<0.000000e+00> : vector<2x8xf32>
    %10 = vector.multi_reduction <add>, %8, %cst_8 [1] : vector<2x12x8xf32> to vector<2x8xf32>
    %cst_9 = arith.constant 1.200000e+01 : f32
    %11 = vector.broadcast %cst_9 : f32 to vector<2x8xf32>
    %12 = arith.divf %10, %11 : vector<2x8xf32>
    %c0_10 = arith.constant 0 : index
    %c0_11 = arith.constant 0 : index
    %13 = vector.load %arg3[%c0_10, %c0_11] : memref<8x32xf32, #tpu.memory_space<vmem>>, vector<8x32xf32>
    %cst_12 = arith.constant dense<0.000000e+00> : vector<2x32xf32>
    %14 = tpu.matmul %9, %13, %cst_12 {dimension_numbers = #tpu.dot_dimension_numbers<[1], [0], [0], [1], [0, 0, 1, 1], [], []>} : vector<2x8xf32>, vector<8x32xf32>, vector<2x32xf32> -> vector<2x32xf32>
    %c0_13 = arith.constant 0 : index
    %c0_14 = arith.constant 0 : index
    %15 = vector.load %arg4[%c0_13, %c0_14] : memref<8x32xf32, #tpu.memory_space<vmem>>, vector<8x32xf32>
    %cst_15 = arith.constant dense<0.000000e+00> : vector<2x32xf32>
    %16 = tpu.matmul %12, %15, %cst_15 {dimension_numbers = #tpu.dot_dimension_numbers<[1], [0], [0], [1], [0, 0, 1, 1], [], []>} : vector<2x8xf32>, vector<8x32xf32>, vector<2x32xf32> -> vector<2x32xf32>
    %17 = arith.addf %14, %16 : vector<2x32xf32>
    %c0_16 = arith.constant 0 : index
    %c0_17 = arith.constant 0 : index
    %18 = vector.load %arg5[%c0_16, %c0_17] : memref<1x32xf32, #tpu.memory_space<vmem>>, vector<1x32xf32>
    %19 = vector.broadcast %18 : vector<1x32xf32> to vector<2x32xf32>
    %20 = arith.addf %17, %19 : vector<2x32xf32>
    %cst_18 = arith.constant 0.000000e+00 : f32
    %21 = vector.broadcast %cst_18 : f32 to vector<2x32xf32>
    %22 = arith.maximumf %20, %21 : vector<2x32xf32>
    %c0_19 = arith.constant 0 : index
    %c0_20 = arith.constant 0 : index
    %23 = vector.load %arg6[%c0_19, %c0_20] : memref<32x1xf32, #tpu.memory_space<vmem>>, vector<32x1xf32>
    %cst_21 = arith.constant dense<0.000000e+00> : vector<2x1xf32>
    %24 = tpu.matmul %22, %23, %cst_21 {dimension_numbers = #tpu.dot_dimension_numbers<[1], [0], [0], [1], [0, 0, 1, 1], [], []>} : vector<2x32xf32>, vector<32x1xf32>, vector<2x1xf32> -> vector<2x1xf32>
    %c0_22 = arith.constant 0 : index
    %c0_23 = arith.constant 0 : index
    %25 = vector.load %arg7[%c0_22, %c0_23] : memref<1x1xf32, #tpu.memory_space<vmem>>, vector<1x1xf32>
    %26 = vector.broadcast %25 : vector<1x1xf32> to vector<2x1xf32>
    %27 = arith.addf %24, %26 : vector<2x1xf32>
    %c0_24 = arith.constant 0 : index
    %c0_25 = arith.constant 0 : index
    %28 = vector.load %arg8[%c0_24, %c0_25] : memref<2x1xf32, #tpu.memory_space<vmem>>, vector<2x1xf32>
    tpu.vector_store %arg8[%c0_24, %c0_25], %27 {strides = array<i32>} : memref<2x1xf32, #tpu.memory_space<vmem>>, vector<2x1xf32>,
    return
  }
}

</mosaic_0001>

<bundles_post_ra>
// kernel: tpu_custom_call.1
= control target key start
LH: loop header
LB: loop body
LE: loop exit
PB: predicated region body
PF: predicated region fallthrough
CT: control target
= control target key end

     0   :  { %v544_v0 = vmov 0.0|0.0   ;;  %vm545_vm0 = vmmov 0   ;;  %v546_v3 = vmov 0.0   ;;  %vm67_vm1 = vcmask 1043456   ;;  %s671_s1 = inlined_call_operand.vmem [shape: f32[20,8], index: 1, kind: input, shape index: {}]   ;;  %s672_s0 = inlined_call_operand.vmem [shape: f32[2,12,20], index: 0, kind: input, shape index: {}]   ;;  %s673_s4 = inlined_call_operand.vmem [shape: f32[8,32], index: 4, kind: input, shape index: {}]   ;;  %s674_s2 = inlined_call_operand.vmem [shape: f32[1,8], index: 2, kind: input, shape index: {}]   ;;  %s675_s3 = inlined_call_operand.vmem [shape: f32[8,32], index: 3, kind: input, shape index: {}]   ;;  %s676_s6 = inlined_call_operand.vmem [shape: f32[32,1], index: 6, kind: input, shape index: {}]   ;;  %s677_s7 = inlined_call_operand.<no memory space> [shape: f32[1,1], index: 7, kind: input, shape index: {}]   ;;  %s678_s5 = inlined_call_operand.vmem [shape: f32[1,32], index: 5, kind: input, shape index: {}]   ;;  %s679_s8 = inlined_call_operand.vmem [shape: f32[2,1], index: 8, kind: output, shape index: {}]  }
   0x1   :  { %529 = vmatprep.subr.bf16.mxu0 %v544_v0  ;;  %v35_v1 = vld [vmem:[%s671_s1] sm:$0xff]  ;;  %v36_v2 = vld [vmem:[%s671_s1 + $0x8] sm:$0xff]  ;;  %499 = vmatprep.mubr.msk.f32.mxu0 %vm545_vm0, %v546_v3  ;;  %v37_v7 = vld [vmem:[%s671_s1 + $0x10] sm:$0xf]  ;;  %vm60_vm2 = vcmask 162816   ;;  %vm174_vm3 = vcmask 64512  }
   0x2   :  { %v530_v4 = vpack.c.bf16 %v36_v2, %v35_v1  ;;  %v31_v5 = vld [vmem:[%s672_s0] sm:$0xff]  ;;  %508 = vmatprep.subr.mxu1 %v546_v3  ;;  %510 = vmatprep.mubr.msk.f32.mxu1 %vm545_vm0, %v546_v3  ;;  %v32_v9 = vld [vmem:[%s672_s0 + $0x8] sm:$0xf]  ;;  %v33_v10 = vld [vmem:[%s672_s0 + $0x10] sm:$0xff]  ;;  %vm176_vm4 = vcmask 60416   ;;  %vm219_vm5 = vcmask 1041409  }
   0x3   :  { %v48_v6 = vcombine.high %v31_v5, %v31_v5  ;;  %v52_v11 = vcombine.low %v32_v9, %v33_v10  ;;  %v49_v12 = vcombine.high %v33_v10, %v33_v10  ;;  %v34_v13 = vld [vmem:[%s672_s0 + $0x18] sm:$0xf]  ;;  %v216_v15 = vld [vmem:[%s673_s4] sm:$0xff]  ;;  %vm388_vm6 = vcmask 261120  }
   0x4   :  { %531 = vmatpush3.bf16.msra.mxu0 %v530_v4  ;;  %509 = vmatpush3.msra.mxu1 %v216_v15  ;;  %v468_v16 = vld [vmem:[%s674_s2] ss:$0 sm:$0xff]  ;;  %vm462_vm7 = vcmask 1024  }
   0x5   :  { %497 = vmatprep.subr.mxu0 %v546_v3  ;;  %v51_v8 = vcombine.low %v31_v5, %v48_v6  ;;  %v53_v14 = vcombine.low %v49_v12, %v34_v13  ;;  %513 = vmatprep.subr.mxu1 %v546_v3  ;;  %v50_v17 = vcombine.high %v468_v16, %v468_v16 }
   0x6   :  { %v55_v22 = vcombine.low %v468_v16, %v468_v16 }
   0x7   :  { %v54_v18 = vcombine.low %v468_v16, %v50_v17  ;;  %v56_v29 = vcombine.low %v50_v17, %v468_v16 }
   0x8   :  { %498 = vmatpush3.msk.msra.mxu0 %vm67_vm1, %v37_v7 }
   0x9   :  { %500 = vmatmul.mubr.msk.f32.vlgmr.msra.gmra.mrb[0].mxu0 %vm60_vm2, %v51_v8 }
   0xa   :  { %502 = vmatprep.mubr.msk.f32.mxu0 %vm545_vm0, %v546_v3 }
   0xd   :  { %503 = vmatmul.mubr.msk.f32.gmra.mrb[2].mxu0 %vm60_vm2, %v52_v11 }
   0xe   :  { %505 = vmatprep.mubr.msk.f32.mxu0 %vm545_vm0, %v546_v3 }
  0x11   :  { %506 = vmatmul.mubr.msk.f32.gmra.mrb[4].mxu0 %vm60_vm2, %v53_v14 }
  0xdc   :  { %v137_v19 = vpop.f32.mrb[0].mxu0 }
  0xdd   :  { %v138_v20 = vadd.f32 %v137_v19, %v54_v18  ;;  %v501_v21 = vpop.f32.mrb[1].mxu0  ;;  %v215_v18 = vld [vmem:[%s675_s3] sm:$0xff] }
  0xde   :  { %v378_v21 = vld [vmem:[%s676_s6 + $0x8] sm:$0xff] }
  0xdf   :  { %v154_v23 = vcombine.high %v138_v20, %v138_v20  ;;  %v160_v25 = vmax.f32 %v138_v20, 0.0  ;;  %v377_v20 = vld [vmem:[%s676_s6] sm:$0xff] }
  0xe0   :  { %v142_v24 = vpop.f32.mrb[2].mxu0 }
  0xe1   :  { %v161_v26 = vmax.f32 %v154_v23, 0.0  ;;  %v143_v27 = vadd.f32 %v142_v24, %v55_v22  ;;  %v504_v28 = vpop.f32.mrb[3].mxu0  ;;  %v533_v22 = vpack.c.bf16 %v378_v21, %v377_v20  ;;  %v379_v23 = vld [vmem:[%s676_s6 + $0x10] sm:$0xff] }
  0xe3   :  { %v170_v30 = vcombine.low %v160_v25, %v161_v26  ;;  %v162_v31 = vmax.f32 %v143_v27, 0.0  ;;  %v155_v32 = vcombine.high %v143_v27, %v143_v27  ;;  %v13_v25 = vstv %s677_s7 }
  0xe4   :  { %v147_v33 = vpop.f32.mrb[4].mxu0  ;;  %14 = vst [vmem:[#allocation2] sm:$0x1] %v13_v25 }
  0xe5   :  { %v175_v34 = vsel %vm174_vm3, %v170_v30, -inf  ;;  %v177_v35 = vsel %vm176_vm4, %v162_v31, -inf  ;;  %v194_v36 = vsel %vm174_vm3, %v170_v30, 0.0  ;;  %v507_v37 = vpop.f32.mrb[5].mxu0  ;;  %v195_v39 = vsel %vm176_vm4, %v162_v31, 0.0 }
  0xe6   :  { %v178_v38 = vmax.f32 %v175_v34, %v177_v35  ;;  %v148_v40 = vadd.f32 %v147_v33, %v56_v29  ;;  %v196_v41 = vadd.f32 %v195_v39, %v194_v36  ;;  %v163_v42 = vmax.f32 %v155_v32, 0.0 }
  0xe8   :  { %v179_v43 = vrot.slane %v178_v38, 4  ;;  %v156_v44 = vcombine.high %v148_v40, %v148_v40  ;;  %v164_v45 = vmax.f32 %v148_v40, 0.0  ;;  %v197_v46 = vrot.slane %v196_v41, 4 }
  0xea   :  { %v180_v47 = vmax.f32 %v178_v38, %v179_v43  ;;  %v165_v48 = vmax.f32 %v156_v44, 0.0  ;;  %v171_v49 = vcombine.low %v163_v42, %v164_v45  ;;  %v198_v50 = vadd.f32 %v197_v46, %v196_v41 }
  0xeb   :  { %v476_v33 = vld [vmem:[#allocation2] ss:$0 sm:$0xff] }
  0xec   :  { %v185_v51 = vsel %vm174_vm3, %v171_v49, -inf  ;;  %v186_v52 = vsel %vm176_vm4, %v165_v48, -inf  ;;  %v203_v53 = vsel %vm174_vm3, %v171_v49, 0.0  ;;  %v181_v54 = vrot.slane %v180_v47, 2 }
  0xed   :  { %v199_v55 = vrot.slane %v198_v50, 2  ;;  %v187_v56 = vmax.f32 %v185_v51, %v186_v52  ;;  %v204_v57 = vsel %vm176_vm4, %v165_v48, 0.0 }
  0xee   :  { %v205_v58 = vadd.f32 %v204_v57, %v203_v53  ;;  %v182_v62 = vmax.f32 %v180_v47, %v181_v54 }
  0xef   :  { %v188_v59 = vrot.slane %v187_v56, 4  ;;  %v200_v60 = vadd.f32 %v199_v55, %v198_v50 }
  0xf0   :  { %v206_v61 = vrot.slane %v205_v58, 4  ;;  %v183_v6 = vrot.slane %v182_v62, 1 }
  0xf1   :  { %v189_v63 = vmax.f32 %v187_v56, %v188_v59  ;;  %v201_v5 = vrot.slane %v200_v60, 1 }
  0xf2   :  { %v207_v1 = vadd.f32 %v206_v61, %v205_v58  ;;  %v184_v12 = vmax.f32 %v182_v62, %v183_v6 }
  0xf3   :  { %v190_v2 = vrot.slane %v189_v63, 2  ;;  %v202_v10 = vadd.f32 %v201_v5, %v200_v60 }
  0xf4   :  { %v208_v4 = vrot.slane %v207_v1, 2 }
  0xf5   :  { %v191_v7 = vmax.f32 %v189_v63, %v190_v2  ;;  %v213_v16 = vmul.f32 0.083333336, %v202_v10 }
  0xf6   :  { %v209_v8 = vadd.f32 %v208_v4, %v207_v1 }
  0xf7   :  { %v192_v9 = vrot.slane %v191_v7, 1 }
  0xf8   :  { %v210_v11 = vrot.slane %v209_v8, 1 }
  0xf9   :  { %v193_v13 = vmax.f32 %v191_v7, %v192_v9 }
  0xfa   :  { %v211_v14 = vadd.f32 %v210_v11, %v209_v8 }
  0xfb   :  { %v295_v15 = vsel %vm219_vm5, %v193_v13, %v184_v12 }
  0xfc   :  { %v214_v17 = vmul.f32 0.083333336, %v211_v14 }
  0xfe   :  { %v220_v19 = vsel %vm219_vm5, %v214_v17, %v213_v16 }
  0xff   :  { %511 = vmatmul.mubr.msk.f32.vlgmr.msra.gmra.mrb[0].mxu1 %vm174_vm3, %v220_v19 }
 0x100   :  { %514 = vmatpush3.msra.mxu1 %v215_v18  ;;  %515 = vmatprep.mubr.msk.f32.mxu1 %vm545_vm0, %v546_v3 }
 0x101   :  { %532 = vmatprep.subr.bf16.mxu1 %v544_v0 }
 0x103   :  { %516 = vmatmul.mubr.msk.f32.vlgmr.msra.gmra.mrb[2].mxu1 %vm174_vm3, %v295_v15 }
 0x104   :  { %526 = vmatprep.mubr.msk.f32.mxu1 %vm545_vm0, %v546_v3  ;;  %534 = vmatpush3.bf16.msra.mxu1 %v533_v22  ;;  %v380_v3 = vld [vmem:[%s676_s6 + $0x18] sm:$0xff] }
 0x105   :  { %535 = vmatprep.subr.bf16.mxu1 %v544_v0  ;;  %v536_v24 = vpack.c.bf16 %v380_v3, %v379_v23  ;;  %v475_v0 = vld [vmem:[%s678_s5] ss:$0 sm:$0xff] }
 0x108   :  { %537 = vmatpush3.bf16.msra.mxu1 %v536_v24 }
 0x1d2   :  { %v289_v26 = vpop.f32.mrb[0].mxu1 }
 0x1d3   :  { %v512_v27 = vpop.f32.mrb[1].mxu1 }
 0x1d6   :  { %v364_v28 = vpop.f32.mrb[2].mxu1 }
 0x1d7   :  { %v365_v29 = vadd.f32 %v364_v28, %v289_v26  ;;  %v517_v30 = vpop.f32.mrb[3].mxu1 }
 0x1d9   :  { %v375_v31 = vadd.f32 %v475_v0, %v365_v29 }
 0x1db   :  { %v376_v32 = vmax.f32 %v375_v31, 0.0 }
 0x1dd   :  { %527 = vmatmul.mubr.msk.f32.vlgmr.msra.gmra.mrb[4].mxu1 %vm388_vm6, %v376_v32 }
 0x2b0   :  { %v458_v34 = vpop.f32.mrb[4].mxu1 }
 0x2b1   :  { %v459_v35 = vadd.f32 %v476_v33, %v458_v34  ;;  %v528_v36 = vpop.f32.mrb[5].mxu1 }
 0x2b3   :  { %463 = vst.msk [vmem:[%s679_s8] sm:$0x3] %vm462_vm7, %v459_v35 }

</bundles_post_ra>
